<compile_context>
chip_gen: v7x
topology: tpu7x:2x2x1
jax: 0.10.0
libtpu: 0.0.40
codegen_flags: <defaults>
</compile_context>

<pallas_src>
import jax
import jax.numpy as jnp
from jax.experimental import pallas as pl
from jax.experimental.pallas import tpu as pltpu


def _soft_ce_kernel(x_ref, t_ref, o_ref):
    """x_ref, t_ref: (tile_n, C); o_ref: (tile_n, 1) per-sample loss."""
    x = x_ref[...].astype(jnp.float32)
    t = t_ref[...].astype(jnp.float32)
    # Numerically stable logsumexp along the class (lane) axis.
    m = jnp.max(x, axis=-1, keepdims=True)
    lse = jnp.log(jnp.sum(jnp.exp(x - m), axis=-1, keepdims=True))
    sum_t = jnp.sum(t, axis=-1, keepdims=True)
    sum_xt = jnp.sum(x * t, axis=-1, keepdims=True)
    # sum_c(-log_softmax(x)_c * t_c) == logsumexp(x) * sum(t) - sum(x * t)
    o_ref[...] = ((m + lse) * sum_t - sum_xt).astype(o_ref.dtype)


def _round_up(v, m):
    return (v + m - 1) // m * m


def _pick_tile_n(n, c, in_itemsize, t_itemsize,
                 vmem_budget_bytes=20 * 1024 * 1024):
    """Largest multiple-of-8 row tile keeping double-buffered inputs plus ~3
    live (tile_n, C_pad) f32 temporaries under the VMEM budget (capped at 1024)."""
    c_pad = _round_up(c, 128)  # lanes Mosaic actually allocates per row
    per_row = 2 * c_pad * (in_itemsize + t_itemsize) + 3 * c_pad * 4
    tile_n = max(8, min(1024, vmem_budget_bytes // per_row))
    tile_n = (tile_n // 8) * 8
    # Don't over-pad tiny batches.
    return min(tile_n, _round_up(n, 8))


def soft_cross_entropy(inputs, targets, reduce=True, tile_n=None):
    """inputs, targets: [N, C] float arrays (f32 or bf16)."""
    n, c = inputs.shape
    assert targets.shape == (n, c), (inputs.shape, targets.shape)

    if tile_n is None:
        tile_n = _pick_tile_n(n, c, inputs.dtype.itemsize, targets.dtype.itemsize)
    tile_n = max(8, (tile_n // 8) * 8)

    # Pad the sample axis so the grid covers it exactly.  Padded rows have
    # zero targets, so their loss is exactly zero.
    n_pad = _round_up(n, tile_n)
    if n_pad != n:
        inputs = jnp.pad(inputs, ((0, n_pad - n), (0, 0)))
        targets = jnp.pad(targets, ((0, n_pad - n), (0, 0)))

    per_sample = pl.pallas_call(
        _soft_ce_kernel,
        out_shape=jax.ShapeDtypeStruct((n_pad, 1), jnp.float32),
        grid_spec=pltpu.PrefetchScalarGridSpec(
            num_scalar_prefetch=0,
            grid=(n_pad // tile_n,),
            in_specs=[
                pl.BlockSpec((tile_n, c), lambda i: (i, 0)),
                pl.BlockSpec((tile_n, c), lambda i: (i, 0)),
            ],
            out_specs=pl.BlockSpec((tile_n, 1), lambda i: (i, 0)),
        ),
        compiler_params=pltpu.CompilerParams(
            dimension_semantics=("parallel",),
            vmem_limit_bytes=32 * 1024 * 1024,
        ),
    )(inputs, targets)

    per_sample = per_sample[:n, 0]  # [N]
    if reduce:
        # Rows are already class-summed, so sum/N == torch.sum(...)/sample_num.
        return jnp.sum(per_sample) / n
    return per_sample


def _reference(inputs, targets, reduce=True):
    x = inputs.astype(jnp.float32)
    t = targets.astype(jnp.float32)
    log_sm = jax.nn.log_softmax(x, axis=1)
    per_sample = jnp.sum(-log_sm * t, axis=1)
    if reduce:
        return jnp.sum(per_sample) / x.shape[0]
    return per_sample


if __name__ == "__main__":
    key = jax.random.PRNGKey(0)
    k1, k2, k3, k4 = jax.random.split(key, 4)

    # Small shapes consistent with the module: [N, C] logits + soft targets.
    N, C = 8, 32
    inputs = jax.random.normal(k1, (N, C), dtype=jnp.float32)
    targets = jax.nn.softmax(jax.random.normal(k2, (N, C), dtype=jnp.float32), axis=1)

    loss_reduced = soft_cross_entropy(inputs, targets, reduce=True)
    loss_per_sample = soft_cross_entropy(inputs, targets, reduce=False)
    jax.block_until_ready((loss_reduced, loss_per_sample))

    assert jnp.allclose(loss_reduced, _reference(inputs, targets, True),
                        atol=1e-5, rtol=1e-5)
    assert jnp.allclose(loss_per_sample, _reference(inputs, targets, False),
                        atol=1e-5, rtol=1e-5)

    # Ragged batch (N not a multiple of the row tile) exercises the padding path.
    N2 = 10
    inputs2 = jax.random.normal(k3, (N2, C), dtype=jnp.float32)
    targets2 = jax.nn.softmax(jax.random.normal(k4, (N2, C), dtype=jnp.float32), axis=1)
    out2 = soft_cross_entropy(inputs2, targets2, reduce=False)
    jax.block_until_ready(out2)
    assert out2.shape == (N2,)
    assert jnp.allclose(out2, _reference(inputs2, targets2, False),
                        atol=1e-5, rtol=1e-5)
    assert jnp.allclose(soft_cross_entropy(inputs2, targets2, reduce=True),
                        _reference(inputs2, targets2, True), atol=1e-5, rtol=1e-5)

    # bf16 inputs (half the HBM traffic on the mem-bound path); kernel upcasts to f32.
    out_bf16 = soft_cross_entropy(inputs.astype(jnp.bfloat16),
                                  targets.astype(jnp.bfloat16), reduce=True)
    jax.block_until_ready(out_bf16)
    assert jnp.allclose(out_bf16,
                        _reference(inputs.astype(jnp.bfloat16),
                                   targets.astype(jnp.bfloat16), True),
                        atol=1e-3, rtol=1e-3)

    print("KERNEL_OK")
</pallas_src>

<mosaic_0001>
module attributes {stable_mosaic.version = 11 : i64} {
  func.func @_soft_ce_kernel(%arg0: i32, %arg1: memref<8x32xf32, #tpu.memory_space<vmem>>, %arg2: memref<8x32xf32, #tpu.memory_space<vmem>>, %arg3: memref<8x1xf32, #tpu.memory_space<vmem>>) attributes {dimension_semantics = [#tpu.dimension_semantics<parallel>], iteration_bounds = array<i64: 1>, scalar_prefetch = 0 : i64, scratch_operands = 0 : i64, tpu.core_type = #tpu.core_type<tc>, window_params = [{transform_indices = @transform_0, window_bounds = array<i64: 8, 32>}, {transform_indices = @transform_1, window_bounds = array<i64: 8, 32>}, {transform_indices = @transform_2, window_bounds = array<i64: 8, 1>}]} {
    %c0 = arith.constant 0 : index
    %c0_0 = arith.constant 0 : index
    %0 = vector.load %arg1[%c0, %c0_0] : memref<8x32xf32, #tpu.memory_space<vmem>>, vector<8x32xf32>
    %c0_1 = arith.constant 0 : index
    %c0_2 = arith.constant 0 : index
    %1 = vector.load %arg2[%c0_1, %c0_2] : memref<8x32xf32, #tpu.memory_space<vmem>>, vector<8x32xf32>
    %cst = arith.constant dense<0xFF800000> : vector<8xf32>
    %2 = vector.multi_reduction <maximumf>, %0, %cst [1] : vector<8x32xf32> to vector<8xf32>
    %3 = vector.shape_cast %2 : vector<8xf32> to vector<8x1xf32>
    %4 = vector.broadcast %3 : vector<8x1xf32> to vector<8x32xf32>
    %5 = arith.subf %0, %4 : vector<8x32xf32>
    %6 = math.exp %5 : vector<8x32xf32>
    %cst_3 = arith.constant dense<0.000000e+00> : vector<8xf32>
    %7 = vector.multi_reduction <add>, %6, %cst_3 [1] : vector<8x32xf32> to vector<8xf32>
    %8 = vector.shape_cast %7 : vector<8xf32> to vector<8x1xf32>
    %9 = math.log %8 : vector<8x1xf32>
    %cst_4 = arith.constant dense<0.000000e+00> : vector<8xf32>
    %10 = vector.multi_reduction <add>, %1, %cst_4 [1] : vector<8x32xf32> to vector<8xf32>
    %11 = vector.shape_cast %10 : vector<8xf32> to vector<8x1xf32>
    %12 = arith.mulf %0, %1 : vector<8x32xf32>
    %cst_5 = arith.constant dense<0.000000e+00> : vector<8xf32>
    %13 = vector.multi_reduction <add>, %12, %cst_5 [1] : vector<8x32xf32> to vector<8xf32>
    %14 = vector.shape_cast %13 : vector<8xf32> to vector<8x1xf32>
    %15 = arith.addf %3, %9 : vector<8x1xf32>
    %16 = arith.mulf %15, %11 : vector<8x1xf32>
    %17 = arith.subf %16, %14 : vector<8x1xf32>
    %c0_6 = arith.constant 0 : index
    %c0_7 = arith.constant 0 : index
    %18 = vector.load %arg3[%c0_6, %c0_7] : memref<8x1xf32, #tpu.memory_space<vmem>>, vector<8x1xf32>
    tpu.vector_store %arg3[%c0_6, %c0_7], %17 {strides = array<i32>} : memref<8x1xf32, #tpu.memory_space<vmem>>, vector<8x1xf32>,
    return
  }
  func.func @transform_0(%arg0: i32) -> (i32, i32) {
    %c0_i32 = arith.constant 0 : i32
    %c0_i32_0 = arith.constant 0 : i32
    return %arg0, %c0_i32 : i32, i32
  }
  func.func @transform_1(%arg0: i32) -> (i32, i32) {
    %c0_i32 = arith.constant 0 : i32
    %c0_i32_0 = arith.constant 0 : i32
    return %arg0, %c0_i32 : i32, i32
  }
  func.func @transform_2(%arg0: i32) -> (i32, i32) {
    %c0_i32 = arith.constant 0 : i32
    %c0_i32_0 = arith.constant 0 : i32
    return %arg0, %c0_i32 : i32, i32
  }
}

</mosaic_0001>

<bundles_post_ra>
// kernel: tpu_custom_call.1
= control target key start
LH: loop header
LB: loop body
LE: loop exit
PB: predicated region body
PF: predicated region fallthrough
CT: control target
= control target key end

     0   :  { %7 = vsyncpa [#allocation3], 0  ;;  %s165_s0 = inlined_call_operand.hbm [shape: f32[8,32], index: 0, kind: input, shape index: {}]   ;;  %s166_s1 = inlined_call_operand.hbm [shape: f32[8,32], index: 1, kind: input, shape index: {}]   ;;  %s167_s2 = inlined_call_operand.vmem [shape: f32[8,1], index: 2, kind: output, shape index: {}]  }
   0x1   :  { %8 = vsyncpa [#allocation5], 0  ;;  %s121_s9 = smov [#allocation2]   ;;  %s122_s11 = smov [#allocation4]  }
   0x2   :  { %s15_s10 = sshll.u32 %s121_s9, 4  ;;  %s25_s12 = sshll.u32 %s122_s11, 4  ;;  %s16_s10 = int_to_ptr.vmem [resolvable:$true] %s15_s10  ;;  %s26_s12 = int_to_ptr.vmem [resolvable:$true] %s25_s12 }
   0x3   :  { %s73_s15 = scalar_lea.hbm %s165_s0, 128 }
   0x4   :  { %p74_p0 = scmp.ne.s32.totalorder %s165_s0, %s73_s15  ;;  %p77_p1 = scmp.lt.u32.totalorder %s73_s15, %s165_s0 }
   0x6   :  { %p79_p2 = pnand %p77_p1, %p74_p0 }
   0x8   :  { %82 = shalt.err (!%p79_p2)
}
   0x9   :  { %s83_s20 = scalar_lea.vmem %s16_s10, 128  ;;  %p88_p4 = scmp.lt.s32.totalorder %s16_s10, %s16_s10 }
   0xa   :  { %p84_p3 = scmp.ne.s32.totalorder %s16_s10, %s83_s20  ;;  %p89_p5 = scmp.lt.s32.totalorder %s83_s20, %s83_s20 }
   0xc   :  { %p90_p6 = por %p89_p5, %p88_p4 }
   0xe   :  { %p91_p7 = pnand %p90_p6, %p84_p3 }
  0x10   :  { %94 = shalt.err (!%p91_p7)
}
  0x11   :  { %18 = dma.hbm_to_vmem [thread:$0]  %s165_s0, 128, %s16_s10, [#allocation3]  }
  0x12   :  { %s95_s25 = scalar_lea.hbm %s166_s1, 128 }
  0x13   :  { %p96_p8 = scmp.ne.s32.totalorder %s166_s1, %s95_s25  ;;  %p99_p9 = scmp.lt.u32.totalorder %s95_s25, %s166_s1 }
  0x15   :  { %p101_p10 = pnand %p99_p9, %p96_p8 }
  0x17   :  { %104 = shalt.err (!%p101_p10)
}
  0x18   :  { %s105_s30 = scalar_lea.vmem %s26_s12, 128  ;;  %p110_p12 = scmp.lt.s32.totalorder %s26_s12, %s26_s12 }
  0x19   :  { %p106_p11 = scmp.ne.s32.totalorder %s26_s12, %s105_s30  ;;  %p111_p13 = scmp.lt.s32.totalorder %s105_s30, %s105_s30 }
  0x1b   :  { %p112_p0 = por %p111_p13, %p110_p12 }
  0x1d   :  { %p113_p1 = pnand %p112_p0, %p106_p11 }
  0x1f   :  { %116 = shalt.err (!%p113_p1)
}
  0x20   :  { %28 = dma.hbm_to_vmem [thread:$0]  %s166_s1, 128, %s26_s12, [#allocation5]  }
  0x21   :  { %117 = dma.done.wait [#allocation3], 128  }
  0x22   :  { %118 = vsyncadd [#allocation3], 4294967168 }
  0x23   :  { %119 = dma.done.wait [#allocation5], 128  }
  0x24   :  { %120 = vsyncadd [#allocation5], 4294967168  ;;  %vm37_vm0 = vcmask 261120   ;;  %v35_v0 = vld [vmem:[#allocation2] sm:$0xff]  ;;  %v36_v2 = vld [vmem:[#allocation4] sm:$0xff]  ;;  %vm59_vm1 = vcmask 7168  }
  0x25   :  { %v38_v1 = vsel %vm37_vm0, %v35_v0, -inf  ;;  %v49_v3 = vsel %vm37_vm0, %v36_v2, 0.0  ;;  %v52_v4 = vmul.f32 %v36_v2, %v35_v0 }
  0x26   :  { %39 = vmax.xlane.f32.xlu0 %v38_v1  ;;  %50 = vadd.xlane.f32.xlu1 %v49_v3 }
  0x27   :  { %v53_v5 = vsel %vm37_vm0, %v52_v4, 0.0 }
  0x2a   :  { %54 = vadd.xlane.f32.xlu1 %v53_v5 }
  0xb3   :  { %v40_v6 = vpop.xlane.xlu0 %39  ;;  %v51_v12 = vpop.xlane.xlu1 %50 }
  0xb4   :  { %v41_v7 = vsub.f32 %v35_v0, %v40_v6 }
  0xb6   :  { %v42_v8 = vmul.f32 1.442695, %v41_v7 }
  0xb7   :  { %v55_v16 = vpop.xlane.xlu1 %54 }
  0xb8   :  { %69 = vpow2.f32 %v42_v8 }
  0xc2   :  { %v70_v9 = vpop.eup %69 }
  0xc3   :  { %v44_v10 = vsel %vm37_vm0, %v70_v9, 0.0 }
  0xc4   :  { %45 = vadd.xlane.f32.xlu0 %v44_v10 }
 0x151   :  { %v46_v11 = vpop.xlane.xlu0 %45 }
 0x152   :  { %71 = vlog2.f32 %v46_v11 }
 0x15c   :  { %v72_v13 = vpop.eup %71 }
 0x15d   :  { %v48_v14 = vmul.f32 0.6931472, %v72_v13 }
 0x15f   :  { %v56_v15 = vadd.f32 %v48_v14, %v40_v6 }
 0x161   :  { %v57_v17 = vmul.f32 %v56_v15, %v51_v12 }
 0x163   :  { %v58_v18 = vsub.f32 %v57_v17, %v55_v16 }
 0x165   :  { %60 = vst.msk [vmem:[%s167_s2] sm:$0xff] %vm59_vm1, %v58_v18 }
 0x166   :  { %65 = vsyncpa [#allocation3], 1 }
 0x167   :  { %66 = vsyncpa [#allocation5], 1 }

</bundles_post_ra>
